<compile_context>
chip_gen: v5e
topology: v5e:2x2
jax: 0.10.0
libtpu: 0.0.40
codegen_flags: <defaults>
</compile_context>

<pallas_src>
import functools

import jax
import jax.numpy as jnp
from jax.experimental import pallas as pl
from jax.experimental.pallas import tpu as pltpu


def _round_up(n, m):
    return ((n + m - 1) // m) * m


def _layernorm_kernel(x_ref, scale_ref, shift_ref, o_ref, *, eps, inv_n):
    # x_ref: (block_rows, emb_dim); scale/shift: (1, emb_dim) broadcast over rows.
    x = x_ref[...].astype(jnp.float32)

    # Two-pass, centered statistics (population variance, unbiased=False).
    mean = jnp.sum(x, axis=-1, keepdims=True) * inv_n
    centered = x - mean
    var = jnp.sum(centered * centered, axis=-1, keepdims=True) * inv_n
    inv_std = jax.lax.rsqrt(var + eps)

    scale = scale_ref[...].astype(jnp.float32)   # (1, emb_dim), single fetch
    shift = shift_ref[...].astype(jnp.float32)

    o_ref[...] = (centered * inv_std * scale + shift).astype(o_ref.dtype)


def layer_norm(x, scale, shift, *, eps=1e-5,
               vmem_budget_bytes=24 << 20, max_block_rows=2048,
               vmem_limit_bytes=48 << 20):
    """LayerNorm over the last axis of x, with learnable scale/shift of shape (emb_dim,)."""
    orig_shape = x.shape
    emb_dim = orig_shape[-1]
    rows = 1
    for d in orig_shape[:-1]:
        rows *= d
    x2d = x.reshape(rows, emb_dim)

    # Sublane alignment: 8 rows for 4-byte dtypes, 16 for bf16, 32 for int8/fp8.
    itemsize = jnp.dtype(x.dtype).itemsize
    row_align = max(8, 32 // max(itemsize, 1))

    # Per-row footprint of the pipelined working set:
    #   2x double-buffered input + 2x double-buffered output in native dtype,
    #   plus ~2 f32 temporaries (the upcast copy and the centered copy).
    bytes_per_row = 4 * emb_dim * itemsize + 2 * emb_dim * 4
    br_cap = max(row_align, vmem_budget_bytes // max(bytes_per_row, 1))
    br_cap = min(br_cap, max_block_rows)
    br_cap = max(row_align, (br_cap // row_align) * row_align)

    # Clamp to the problem size (aligned) and rebalance the ragged last block.
    rows_aligned = _round_up(rows, row_align)
    br_cap = min(br_cap, rows_aligned)
    steps = pl.cdiv(rows, br_cap)
    # Keep >=2 grid steps for medium/large inputs so the "parallel" axis can actually
    # split across the two v7x TensorCores instead of leaving one idle.
    if steps == 1 and rows >= 2 * row_align and rows * emb_dim * itemsize > (1 << 20):
        steps = 2
    br = _round_up(pl.cdiv(rows, steps), row_align)
    br = min(br, rows_aligned)

    grid = (pl.cdiv(rows, br),)

    scale2d = scale.reshape(1, emb_dim)
    shift2d = shift.reshape(1, emb_dim)

    kernel = functools.partial(
        _layernorm_kernel,
        eps=float(eps),               # plain Python floats -> compile-time constants
        inv_n=float(1.0 / emb_dim),
    )

    out = pl.pallas_call(
        kernel,
        out_shape=jax.ShapeDtypeStruct((rows, emb_dim), x.dtype),
        grid_spec=pltpu.PrefetchScalarGridSpec(
            num_scalar_prefetch=0,
            grid=grid,
            in_specs=[
                pl.BlockSpec((br, emb_dim), lambda i: (i, 0)),
                pl.BlockSpec((1, emb_dim), lambda i: (0, 0)),   # copy elided across steps
                pl.BlockSpec((1, emb_dim), lambda i: (0, 0)),
            ],
            out_specs=pl.BlockSpec((br, emb_dim), lambda i: (i, 0)),
        ),
        compiler_params=pltpu.CompilerParams(
            dimension_semantics=("parallel",),
            vmem_limit_bytes=vmem_limit_bytes,
        ),
    )(x2d, scale2d, shift2d)

    return out.reshape(orig_shape)


if __name__ == "__main__":
    key = jax.random.PRNGKey(0)

    batch, seq, emb_dim = 2, 4, 768  # matches torch.rand(2, 4, 768) in the reference
    x = jax.random.normal(key, (batch, seq, emb_dim), dtype=jnp.float32)

    # Deterministic parameter init, same as the module's __init__:
    # scale = ones(emb_dim), shift = zeros(emb_dim)
    scale = jnp.ones((emb_dim,), dtype=jnp.float32)
    shift = jnp.zeros((emb_dim,), dtype=jnp.float32)

    out = layer_norm(x, scale, shift)
    out = jax.block_until_ready(out)

    # Reference check in plain JAX (population variance, eps=1e-5).
    mean = jnp.mean(x, axis=-1, keepdims=True)
    var = jnp.mean((x - mean) ** 2, axis=-1, keepdims=True)
    ref = scale * ((x - mean) / jnp.sqrt(var + 1e-5)) + shift
    assert out.shape == x.shape
    assert jnp.max(jnp.abs(out - ref)) < 1e-4

    print("KERNEL_OK")
</pallas_src>

<mosaic_0001>
module attributes {stable_mosaic.version = 11 : i64} {
  func.func @_layernorm_kernel(%arg0: i32, %arg1: memref<8x768xf32, #tpu.memory_space<vmem>>, %arg2: memref<1x768xf32, #tpu.memory_space<vmem>>, %arg3: memref<1x768xf32, #tpu.memory_space<vmem>>, %arg4: memref<8x768xf32, #tpu.memory_space<vmem>>) attributes {dimension_semantics = [#tpu.dimension_semantics<parallel>], iteration_bounds = array<i64: 1>, scalar_prefetch = 0 : i64, scratch_operands = 0 : i64, tpu.core_type = #tpu.core_type<tc>, window_params = [{transform_indices = @transform_0, window_bounds = array<i64: 8, 768>}, {pipeline_mode = #tpu.pipeline_mode<synchronous>, transform_indices = @transform_1, window_bounds = array<i64: 1, 768>}, {pipeline_mode = #tpu.pipeline_mode<synchronous>, transform_indices = @transform_2, window_bounds = array<i64: 1, 768>}, {transform_indices = @transform_3, window_bounds = array<i64: 8, 768>}]} {
    %c0 = arith.constant 0 : index
    %c0_0 = arith.constant 0 : index
    %0 = vector.load %arg1[%c0, %c0_0] : memref<8x768xf32, #tpu.memory_space<vmem>>, vector<8x768xf32>
    %cst = arith.constant dense<0.000000e+00> : vector<8xf32>
    %1 = vector.multi_reduction <add>, %0, %cst [1] : vector<8x768xf32> to vector<8xf32>
    %2 = vector.shape_cast %1 : vector<8xf32> to vector<8x1xf32>
    %cst_1 = arith.constant 0.00130208337 : f32
    %3 = vector.broadcast %cst_1 : f32 to vector<8x1xf32>
    %4 = arith.mulf %2, %3 : vector<8x1xf32>
    %5 = vector.broadcast %4 : vector<8x1xf32> to vector<8x768xf32>
    %6 = arith.subf %0, %5 : vector<8x768xf32>
    %7 = arith.mulf %6, %6 : vector<8x768xf32>
    %cst_2 = arith.constant dense<0.000000e+00> : vector<8xf32>
    %8 = vector.multi_reduction <add>, %7, %cst_2 [1] : vector<8x768xf32> to vector<8xf32>
    %9 = vector.shape_cast %8 : vector<8xf32> to vector<8x1xf32>
    %cst_3 = arith.constant 0.00130208337 : f32
    %10 = vector.broadcast %cst_3 : f32 to vector<8x1xf32>
    %11 = arith.mulf %9, %10 : vector<8x1xf32>
    %cst_4 = arith.constant 9.99999974E-6 : f32
    %12 = vector.broadcast %cst_4 : f32 to vector<8x1xf32>
    %13 = arith.addf %11, %12 : vector<8x1xf32>
    %14 = math.rsqrt %13 : vector<8x1xf32>
    %c0_5 = arith.constant 0 : index
    %c0_6 = arith.constant 0 : index
    %15 = vector.load %arg2[%c0_5, %c0_6] : memref<1x768xf32, #tpu.memory_space<vmem>>, vector<1x768xf32>
    %c0_7 = arith.constant 0 : index
    %c0_8 = arith.constant 0 : index
    %16 = vector.load %arg3[%c0_7, %c0_8] : memref<1x768xf32, #tpu.memory_space<vmem>>, vector<1x768xf32>
    %17 = vector.broadcast %14 : vector<8x1xf32> to vector<8x768xf32>
    %18 = arith.mulf %6, %17 : vector<8x768xf32>
    %19 = vector.broadcast %15 : vector<1x768xf32> to vector<8x768xf32>
    %20 = arith.mulf %18, %19 : vector<8x768xf32>
    %21 = vector.broadcast %16 : vector<1x768xf32> to vector<8x768xf32>
    %22 = arith.addf %20, %21 : vector<8x768xf32>
    %c0_9 = arith.constant 0 : index
    %c0_10 = arith.constant 0 : index
    %23 = vector.load %arg4[%c0_9, %c0_10] : memref<8x768xf32, #tpu.memory_space<vmem>>, vector<8x768xf32>
    tpu.vector_store %arg4[%c0_9, %c0_10], %22 {strides = array<i32>} : memref<8x768xf32, #tpu.memory_space<vmem>>, vector<8x768xf32>,
    return
  }
  func.func @transform_0(%arg0: i32) -> (i32, i32) {
    %c0_i32 = arith.constant 0 : i32
    %c0_i32_0 = arith.constant 0 : i32
    return %arg0, %c0_i32 : i32, i32
  }
  func.func @transform_1(%arg0: i32) -> (i32, i32) {
    %c0_i32 = arith.constant 0 : i32
    %c0_i32_0 = arith.constant 0 : i32
    %c0_i32_1 = arith.constant 0 : i32
    return %c0_i32, %c0_i32_0 : i32, i32
  }
  func.func @transform_2(%arg0: i32) -> (i32, i32) {
    %c0_i32 = arith.constant 0 : i32
    %c0_i32_0 = arith.constant 0 : i32
    %c0_i32_1 = arith.constant 0 : i32
    return %c0_i32, %c0_i32_0 : i32, i32
  }
  func.func @transform_3(%arg0: i32) -> (i32, i32) {
    %c0_i32 = arith.constant 0 : i32
    %c0_i32_0 = arith.constant 0 : i32
    return %arg0, %c0_i32 : i32, i32
  }
}

</mosaic_0001>

<bundles_post_ra>
// kernel: tpu_custom_call.1
= control target key start
LH: loop header
LB: loop body
LE: loop exit
PB: predicated region body
PF: predicated region fallthrough
CT: control target
= control target key end

     0   :  { %8 = vsyncpa [#allocation3], 0  ;;  %s315_s0 = inlined_call_operand.hbm [shape: f32[8,768], index: 0, kind: input, shape index: {}]   ;;  %s316_s1 = inlined_call_operand.hbm [shape: f32[1,768], index: 1, kind: input, shape index: {}]   ;;  %s317_s2 = inlined_call_operand.hbm [shape: f32[1,768], index: 2, kind: input, shape index: {}]   ;;  %s318_s3 = inlined_call_operand.hbm [shape: f32[8,768], index: 3, kind: output, shape index: {}]  }
   0x1   :  { %9 = vsyncpa [#allocation6], 0  ;;  %s27_s14 = sshll.u32 %s316_s1, 4  ;;  %s28_s14 = int_to_ptr.hbm [resolvable:$true] %s27_s14 }
   0x2   :  { %10 = vsyncpa [#allocation4], 0  ;;  %s279_s15 = smov [#allocation5]   ;;  %s16_s19 = sshll.u32 %s315_s0, 4  ;;  %s17_s19 = int_to_ptr.hbm [resolvable:$true] %s16_s19 }
   0x3   :  { %s29_s16 = sshll.u32 %s279_s15, 4  ;;  %s280_s20 = smov [#allocation2]   ;;  %s30_s16 = int_to_ptr.vmem [resolvable:$true] %s29_s16 }
   0x4   :  { %32 = dma.hbm_to_vmem [thread:$0]  %s28_s14, 96, %s30_s16, [#allocation6]  }
   0x5   :  { %s18_s21 = sshll.u32 %s280_s20, 4  ;;  %s38_s24 = sshll.u32 %s317_s2, 4  ;;  %s19_s21 = int_to_ptr.vmem [resolvable:$true] %s18_s21  ;;  %s39_s24 = int_to_ptr.hbm [resolvable:$true] %s38_s24 }
   0x6   :  { %21 = dma.hbm_to_vmem [thread:$0]  %s17_s19, 768, %s19_s21, [#allocation3]  }
   0x7   :  { %s281_s1 = smov [#allocation7]  }
   0x8   :  { %s40_s25 = sshll.u32 %s281_s1, 4  ;;  %s41_s25 = int_to_ptr.vmem [resolvable:$true] %s40_s25 }
   0x9   :  { %43 = dma.hbm_to_vmem [thread:$0]  %s39_s24, 96, %s41_s25, [#allocation6]  }
   0xa   :  { %273 = dma.done.wait [#allocation3], 768  }
   0xb   :  { %274 = vsyncadd [#allocation3], 4294966528 }
   0xc   :  { %275 = dma.done.wait [#allocation6], 192  }
   0xd   :  { %276 = vsyncadd [#allocation6], 4294967104  ;;  %v56_v0 = vld [vmem:[#allocation2] sm:$0xff]  ;;  %v57_v1 = vld [vmem:[#allocation2 + $0x8] sm:$0xff]  ;;  %s282_s0 = smov [#allocation8]   ;;  %s160_s28 = sshll.u32 %s318_s3, 4  ;;  %s161_s28 = int_to_ptr.hbm [resolvable:$true] %s160_s28 }
   0xe   :  { %v58_v2 = vld [vmem:[#allocation2 + $0x10] sm:$0xff]  ;;  %v62_v3 = vadd.f32 %v57_v1, %v56_v0  ;;  %v59_v4 = vld [vmem:[#allocation2 + $0x18] sm:$0xff]  ;;  %v60_v6 = vld [vmem:[#allocation2 + $0x20] sm:$0xff]  ;;  %s158_s2 = sshll.u32 %s282_s0, 4  ;;  %s159_s2 = int_to_ptr.vmem [resolvable:$true] %s158_s2 }
   0xf   :  { %v61_v8 = vld [vmem:[#allocation2 + $0x28] sm:$0xff]  ;;  %v101_v37 = vld [vmem:[#allocation5] sm:$0x3f]  ;;  %v102_v39 = vld [vmem:[#allocation7] sm:$0x3f] }
  0x10   :  { %v63_v5 = vadd.f32 %v62_v3, %v58_v2  ;;  %v110_v40 = vperm.slane %v101_v37, 0  ;;  %v111_v41 = vperm.slane %v101_v37, 1  ;;  %v112_v43 = vperm.slane %v101_v37, 2 }
  0x11   :  { %v113_v44 = vperm.slane %v101_v37, 3  ;;  %v114_v45 = vperm.slane %v101_v37, 4  ;;  %v115_v46 = vperm.slane %v101_v37, 5  ;;  %v129_v47 = vperm.slane %v102_v39, 0 }
  0x12   :  { %v64_v7 = vadd.f32 %v63_v5, %v59_v4  ;;  %v130_v48 = vperm.slane %v102_v39, 1  ;;  %v131_v49 = vperm.slane %v102_v39, 2  ;;  %v132_v55 = vperm.slane %v102_v39, 3 }
  0x13   :  { %v133_v56 = vperm.slane %v102_v39, 4  ;;  %v134_v63 = vperm.slane %v102_v39, 5 }
  0x14   :  { %v65_v9 = vadd.f32 %v64_v7, %v60_v6 }
  0x16   :  { %v66_v10 = vadd.f32 %v65_v9, %v61_v8 }
  0x18   :  { %67 = vadd.xlane.f32.xlu0 %v66_v10 }
  0x8b   :  { %v68_v11 = vpop.xlane.xlu0 %67 }
  0x8c   :  { %v69_v12 = vmul.f32 0.0013020834, %v68_v11 }
  0x8e   :  { %v70_v13 = vsub.f32 %v56_v0, %v69_v12  ;;  %v71_v14 = vsub.f32 %v57_v1, %v69_v12  ;;  %v72_v15 = vsub.f32 %v58_v2, %v69_v12  ;;  %v73_v16 = vsub.f32 %v59_v4, %v69_v12 }
  0x8f   :  { %v74_v19 = vsub.f32 %v60_v6, %v69_v12  ;;  %v75_v22 = vsub.f32 %v61_v8, %v69_v12 }
  0x90   :  { %v76_v17 = vmul.f32 %v70_v13, %v70_v13  ;;  %v77_v18 = vmul.f32 %v71_v14, %v71_v14  ;;  %v78_v20 = vmul.f32 %v72_v15, %v72_v15  ;;  %v79_v23 = vmul.f32 %v73_v16, %v73_v16 }
  0x91   :  { %v80_v25 = vmul.f32 %v74_v19, %v74_v19  ;;  %v81_v27 = vmul.f32 %v75_v22, %v75_v22 }
  0x92   :  { %v82_v21 = vadd.f32 %v77_v18, %v76_v17 }
  0x94   :  { %v83_v24 = vadd.f32 %v82_v21, %v78_v20 }
  0x96   :  { %v84_v26 = vadd.f32 %v83_v24, %v79_v23 }
  0x98   :  { %v85_v28 = vadd.f32 %v84_v26, %v80_v25 }
  0x9a   :  { %v86_v29 = vadd.f32 %v85_v28, %v81_v27 }
  0x9c   :  { %87 = vadd.xlane.f32.xlu0 %v86_v29 }
 0x10f   :  { %v88_v30 = vpop.xlane.xlu0 %87 }
 0x110   :  { %v89_v31 = vmul.f32 0.0013020834, %v88_v30 }
 0x112   :  { %v90_v32 = vadd.f32 1e-05, %v89_v31 }
 0x114   :  { %175 = vrsqrt.f32 %v90_v32  ;;  %vm97_vm1 = vweird.f32 %v90_v32 }
 0x11a   :  { %v176_v33 = vpop.eup %175 }
 0x11b   :  { %v92_v34 = vmul.f32 %v176_v33, %v90_v32  ;;  %vm98_vm0 = vweird.f32 %v176_v33 }
 0x11c   :  { %vm99_vm2 = vmor %vm97_vm1, %vm98_vm0 }
 0x11d   :  { %v93_v35 = vmul.f32 %v176_v33, %v92_v34 }
 0x11f   :  { %v94_v36 = vmul.f32 0.5, %v93_v35 }
 0x121   :  { %v95_v38 = vsub.f32 1.5, %v94_v36 }
 0x123   :  { %v96_v42 = vmul.f32 %v176_v33, %v95_v38 }
 0x125   :  { %v100_v50 = vsel %vm99_vm2, %v176_v33, %v96_v42 }
 0x126   :  { %v103_v51 = vmul.f32 %v100_v50, %v70_v13  ;;  %v104_v52 = vmul.f32 %v100_v50, %v71_v14  ;;  %v105_v53 = vmul.f32 %v100_v50, %v72_v15  ;;  %v106_v54 = vmul.f32 %v100_v50, %v73_v16 }
 0x127   :  { %v107_v57 = vmul.f32 %v100_v50, %v74_v19  ;;  %v108_v58 = vmul.f32 %v100_v50, %v75_v22 }
 0x128   :  { %v122_v59 = vmul.f32 %v110_v40, %v103_v51  ;;  %v123_v60 = vmul.f32 %v111_v41, %v104_v52  ;;  %v124_v61 = vmul.f32 %v112_v43, %v105_v53  ;;  %v125_v62 = vmul.f32 %v113_v44, %v106_v54 }
 0x129   :  { %v126_v0 = vmul.f32 %v114_v45, %v107_v57  ;;  %v127_v1 = vmul.f32 %v115_v46, %v108_v58 }
 0x12a   :  { %v141_v2 = vadd.f32 %v129_v47, %v122_v59  ;;  %v142_v3 = vadd.f32 %v130_v48, %v123_v60  ;;  %v143_v4 = vadd.f32 %v131_v49, %v124_v61  ;;  %v144_v5 = vadd.f32 %v132_v55, %v125_v62 }
 0x12b   :  { %v145_v6 = vadd.f32 %v133_v56, %v126_v0  ;;  %v146_v7 = vadd.f32 %v134_v63, %v127_v1 }
 0x12c   :  { %147 = vst [vmem:[#allocation8] sm:$0xff] %v141_v2 }
 0x12d   :  { %148 = vst [vmem:[#allocation8 + $0x8] sm:$0xff] %v142_v3 }
 0x12e   :  { %149 = vst [vmem:[#allocation8 + $0x10] sm:$0xff] %v143_v4 }
 0x12f   :  { %150 = vst [vmem:[#allocation8 + $0x18] sm:$0xff] %v144_v5 }
 0x130   :  { %151 = vst [vmem:[#allocation8 + $0x20] sm:$0xff] %v145_v6 }
 0x131   :  { %152 = vst [vmem:[#allocation8 + $0x28] sm:$0xff] %v146_v7 }
 0x132   :  { %163 = dma.vmem_to_hbm [thread:$0]  %s159_s2, 768, %s161_s28, [#allocation4]  }
 0x133   :  { %277 = dma.done.wait [#allocation4], 768  }
 0x134   :  { %278 = vsyncadd [#allocation4], 4294966528 }
 0x135   :  { %168 = vsyncpa [#allocation3], 1 }
 0x136   :  { %169 = vsyncpa [#allocation6], 1 }
 0x137   :  { %170 = vsyncpa [#allocation4], 1 }

</bundles_post_ra>
